<compile_context>
chip_gen: v7x
topology: tpu7x:2x2x1
jax: 0.10.0
libtpu: 0.0.40
codegen_flags: <defaults>
</compile_context>

<pallas_src>
import jax
import jax.numpy as jnp
from jax import lax
from jax.experimental import pallas as pl
from jax.experimental.pallas import tpu as pltpu


_LANE = 128
_SUBLANE = 8
# Budget (bytes) for the 4 double-buffered input blocks.  Conservative enough
# for v7x's 64 MiB/TC VMEM (leaves headroom for in-kernel f32 temporaries)
# while big enough that the per-grid-step overhead is amortized.
_INPUT_VMEM_BUDGET = 24 * 1024 * 1024
_VMEM_LIMIT_BYTES = 48 * 1024 * 1024


def _round_up(x, m):
    return ((x + m - 1) // m) * m


def _make_kernel(tile_b, true_b):
    """Kernel factory closing over the static tile size and true batch size."""

    def kernel(z1_ref, z2_ref, p1_ref, p2_ref, w_ref, out_ref):
        eps2 = jnp.float32(1e-24)  # (1e-12)^2 -> matches torch F.normalize eps

        # Explicit row mask for the ragged last batch tile: rows read past the
        # end of the arrays may contain inf/NaN garbage, so mask the final
        # per-row contribution instead of relying on w == 0 (0 * NaN = NaN).
        row0 = pl.program_id(0) * tile_b
        rows = lax.broadcasted_iota(jnp.int32, (tile_b, 1), 0) + row0
        valid = rows < true_b  # (tile_b, 1) bool

        w = w_ref[...].astype(jnp.float32)  # (tile_b, 1), already * (-0.5/B)

        def weighted_cos(p_ref, z_ref):
            # Single pass over the (tile_b, D) tiles: each chunk feeds all
            # three row reductions; rsqrt runs on the (otherwise idle) EUP.
            p = p_ref[...].astype(jnp.float32)
            z = z_ref[...].astype(jnp.float32)
            pp = jnp.sum(p * p, axis=1, keepdims=True)  # (tile_b, 1)
            zz = jnp.sum(z * z, axis=1, keepdims=True)  # (tile_b, 1)
            pz = jnp.sum(p * z, axis=1, keepdims=True)  # (tile_b, 1)
            inv = lax.rsqrt(jnp.maximum(pp, eps2) * jnp.maximum(zz, eps2))
            return pz * inv

        contrib = (weighted_cos(p1_ref, z2_ref) + weighted_cos(p2_ref, z1_ref)) * w
        contrib = jnp.where(valid, contrib, jnp.float32(0.0))
        out_ref[...] = jnp.sum(contrib, axis=0, keepdims=True).reshape(1, 1, 1)

    return kernel


def simsiam_loss_cost_sensitive(z1, z2, p1, p2, targets, costs):
    """Pallas implementation of SimSiamLoss_cost_sensitive.forward."""
    B, D = p1.shape

    # Per-sample cost lookup with -0.5/B folded in (covers the two means, the
    # 0.5*loss1 + 0.5*loss2 combine and the negation).
    w = (-0.5 / B) * jnp.take(costs.astype(jnp.float32), targets, axis=0)
    w = w.reshape(B, 1)

    # Tile only the batch dim; the feature dim stays at its true extent
    # (full-extent last-dim blocks satisfy the (8,128) rule), so no jnp.pad
    # HBM copies are needed and inputs are streamed in their native dtype.
    itemsize = jnp.dtype(p1.dtype).itemsize
    per_row_bytes = 4 * 2 * D * itemsize  # 4 inputs x 2 pipeline buffers
    tile_b = max(_SUBLANE, min(_INPUT_VMEM_BUDGET // per_row_bytes, 2048))
    tile_b = (tile_b // _SUBLANE) * _SUBLANE
    tile_b = min(tile_b, _round_up(B, _SUBLANE))
    if B > _SUBLANE:
        # v7x megacore: keep >= 2 grid steps so both TensorCores get work.
        half = _round_up(B, 2 * _SUBLANE) // 2
        tile_b = min(tile_b, max(_SUBLANE, half))
    num_tiles = pl.cdiv(B, tile_b)

    emb_spec = pl.BlockSpec((tile_b, D), lambda i: (i, 0))
    w_spec = pl.BlockSpec((tile_b, 1), lambda i: (i, 0))
    out_spec = pl.BlockSpec((1, 1, 1), lambda i: (i, 0, 0))

    cost = pl.CostEstimate(
        flops=12 * B * D,                # 3 mul + 3 add per elem, two cosines
        transcendentals=2 * B,           # one rsqrt per row per cosine
        bytes_accessed=4 * B * D * itemsize + B * 4 + num_tiles * 4,
    )

    partials = pl.pallas_call(
        _make_kernel(tile_b, B),
        out_shape=jax.ShapeDtypeStruct((num_tiles, 1, 1), jnp.float32),
        grid_spec=pltpu.PrefetchScalarGridSpec(
            num_scalar_prefetch=0,
            grid=(num_tiles,),
            in_specs=[emb_spec, emb_spec, emb_spec, emb_spec, w_spec],
            out_specs=out_spec,
        ),
        compiler_params=pltpu.CompilerParams(
            dimension_semantics=("parallel",),
            vmem_limit_bytes=_VMEM_LIMIT_BYTES,
        ),
        cost_estimate=cost,
    )(z1, z2, p1, p2, w)

    # Tiny (num_tiles,) final reduction over per-tile partial sums (JAX glue).
    return jnp.sum(partials)


def _reference(z1, z2, p1, p2, targets, costs):
    def asym(p, z):
        p = p / jnp.maximum(jnp.linalg.norm(p, axis=1, keepdims=True), 1e-12)
        z = z / jnp.maximum(jnp.linalg.norm(z, axis=1, keepdims=True), 1e-12)
        return -jnp.mean(jnp.sum(p * z, axis=1) * costs[targets])

    return 0.5 * asym(p1, z2) + 0.5 * asym(p2, z1)


if __name__ == "__main__":
    key = jax.random.PRNGKey(0)
    B, D, num_classes = 8, 32, 4

    k1, k2, k3, k4, k5, k6 = jax.random.split(key, 6)
    z1 = jax.random.normal(k1, (B, D), dtype=jnp.float32)
    z2 = jax.random.normal(k2, (B, D), dtype=jnp.float32)
    p1 = jax.random.normal(k3, (B, D), dtype=jnp.float32)
    p2 = jax.random.normal(k4, (B, D), dtype=jnp.float32)
    targets = jax.random.randint(k5, (B,), 0, num_classes)
    # deterministic "costs" parameter from the module's __init__
    costs = jax.random.uniform(k6, (num_classes,), minval=0.5, maxval=2.0,
                               dtype=jnp.float32)

    loss = simsiam_loss_cost_sensitive(z1, z2, p1, p2, targets, costs)
    loss = jax.block_until_ready(loss)

    ref = _reference(z1, z2, p1, p2, targets, costs)
    assert jnp.allclose(loss, ref, atol=1e-5, rtol=1e-5), (loss, ref)

    print("KERNEL_OK")
</pallas_src>

<mosaic_0001>
module attributes {stable_mosaic.version = 11 : i64} {
  func.func @kernel(%arg0: i32, %arg1: memref<8x32xf32, #tpu.memory_space<vmem>>, %arg2: memref<8x32xf32, #tpu.memory_space<vmem>>, %arg3: memref<8x32xf32, #tpu.memory_space<vmem>>, %arg4: memref<8x32xf32, #tpu.memory_space<vmem>>, %arg5: memref<8x1xf32, #tpu.memory_space<vmem>>, %arg6: memref<1x1x1xf32, #tpu.memory_space<vmem>>) attributes {dimension_semantics = [#tpu.dimension_semantics<parallel>], iteration_bounds = array<i64: 1>, scalar_prefetch = 0 : i64, scratch_operands = 0 : i64, tpu.core_type = #tpu.core_type<tc>, window_params = [{transform_indices = @transform_0, window_bounds = array<i64: 8, 32>}, {transform_indices = @transform_1, window_bounds = array<i64: 8, 32>}, {transform_indices = @transform_2, window_bounds = array<i64: 8, 32>}, {transform_indices = @transform_3, window_bounds = array<i64: 8, 32>}, {transform_indices = @transform_4, window_bounds = array<i64: 8, 1>}, {transform_indices = @transform_5, window_bounds = array<i64: 1, 1, 1>}]} {
    %c8_i32 = arith.constant 8 : i32
    %0 = arith.muli %arg0, %c8_i32 : i32
    %1 = tpu.iota {dimensions = array<i32: 0>} : vector<8x1xi32>
    %2 = vector.broadcast %0 : i32 to vector<8x1xi32>
    %3 = arith.addi %1, %2 : vector<8x1xi32>
    %c8_i32_0 = arith.constant 8 : i32
    %4 = vector.broadcast %c8_i32_0 : i32 to vector<8x1xi32>
    %5 = arith.cmpi slt, %3, %4 : vector<8x1xi32>
    %c0 = arith.constant 0 : index
    %c0_1 = arith.constant 0 : index
    %6 = vector.load %arg5[%c0, %c0_1] : memref<8x1xf32, #tpu.memory_space<vmem>>, vector<8x1xf32>
    %c0_2 = arith.constant 0 : index
    %c0_3 = arith.constant 0 : index
    %7 = vector.load %arg3[%c0_2, %c0_3] : memref<8x32xf32, #tpu.memory_space<vmem>>, vector<8x32xf32>
    %c0_4 = arith.constant 0 : index
    %c0_5 = arith.constant 0 : index
    %8 = vector.load %arg2[%c0_4, %c0_5] : memref<8x32xf32, #tpu.memory_space<vmem>>, vector<8x32xf32>
    %9 = arith.mulf %7, %7 : vector<8x32xf32>
    %cst = arith.constant dense<0.000000e+00> : vector<8xf32>
    %10 = vector.multi_reduction <add>, %9, %cst [1] : vector<8x32xf32> to vector<8xf32>
    %11 = vector.shape_cast %10 : vector<8xf32> to vector<8x1xf32>
    %12 = arith.mulf %8, %8 : vector<8x32xf32>
    %cst_6 = arith.constant dense<0.000000e+00> : vector<8xf32>
    %13 = vector.multi_reduction <add>, %12, %cst_6 [1] : vector<8x32xf32> to vector<8xf32>
    %14 = vector.shape_cast %13 : vector<8xf32> to vector<8x1xf32>
    %15 = arith.mulf %7, %8 : vector<8x32xf32>
    %cst_7 = arith.constant dense<0.000000e+00> : vector<8xf32>
    %16 = vector.multi_reduction <add>, %15, %cst_7 [1] : vector<8x32xf32> to vector<8xf32>
    %17 = vector.shape_cast %16 : vector<8xf32> to vector<8x1xf32>
    %cst_8 = arith.constant 1.000000e-24 : f32
    %18 = vector.broadcast %cst_8 : f32 to vector<8x1xf32>
    %19 = arith.maximumf %11, %18 : vector<8x1xf32>
    %cst_9 = arith.constant 1.000000e-24 : f32
    %20 = vector.broadcast %cst_9 : f32 to vector<8x1xf32>
    %21 = arith.maximumf %14, %20 : vector<8x1xf32>
    %22 = arith.mulf %19, %21 : vector<8x1xf32>
    %23 = math.rsqrt %22 : vector<8x1xf32>
    %24 = arith.mulf %17, %23 : vector<8x1xf32>
    %c0_10 = arith.constant 0 : index
    %c0_11 = arith.constant 0 : index
    %25 = vector.load %arg4[%c0_10, %c0_11] : memref<8x32xf32, #tpu.memory_space<vmem>>, vector<8x32xf32>
    %c0_12 = arith.constant 0 : index
    %c0_13 = arith.constant 0 : index
    %26 = vector.load %arg1[%c0_12, %c0_13] : memref<8x32xf32, #tpu.memory_space<vmem>>, vector<8x32xf32>
    %27 = arith.mulf %25, %25 : vector<8x32xf32>
    %cst_14 = arith.constant dense<0.000000e+00> : vector<8xf32>
    %28 = vector.multi_reduction <add>, %27, %cst_14 [1] : vector<8x32xf32> to vector<8xf32>
    %29 = vector.shape_cast %28 : vector<8xf32> to vector<8x1xf32>
    %30 = arith.mulf %26, %26 : vector<8x32xf32>
    %cst_15 = arith.constant dense<0.000000e+00> : vector<8xf32>
    %31 = vector.multi_reduction <add>, %30, %cst_15 [1] : vector<8x32xf32> to vector<8xf32>
    %32 = vector.shape_cast %31 : vector<8xf32> to vector<8x1xf32>
    %33 = arith.mulf %25, %26 : vector<8x32xf32>
    %cst_16 = arith.constant dense<0.000000e+00> : vector<8xf32>
    %34 = vector.multi_reduction <add>, %33, %cst_16 [1] : vector<8x32xf32> to vector<8xf32>
    %35 = vector.shape_cast %34 : vector<8xf32> to vector<8x1xf32>
    %cst_17 = arith.constant 1.000000e-24 : f32
    %36 = vector.broadcast %cst_17 : f32 to vector<8x1xf32>
    %37 = arith.maximumf %29, %36 : vector<8x1xf32>
    %cst_18 = arith.constant 1.000000e-24 : f32
    %38 = vector.broadcast %cst_18 : f32 to vector<8x1xf32>
    %39 = arith.maximumf %32, %38 : vector<8x1xf32>
    %40 = arith.mulf %37, %39 : vector<8x1xf32>
    %41 = math.rsqrt %40 : vector<8x1xf32>
    %42 = arith.mulf %35, %41 : vector<8x1xf32>
    %43 = arith.addf %24, %42 : vector<8x1xf32>
    %44 = arith.mulf %43, %6 : vector<8x1xf32>
    %cst_19 = arith.constant 0.000000e+00 : f32
    %45 = vector.broadcast %cst_19 : f32 to vector<8x1xf32>
    %46 = arith.select %5, %44, %45 : vector<8x1xi1>, vector<8x1xf32>
    %cst_20 = arith.constant dense<0.000000e+00> : vector<1xf32>
    %47 = vector.multi_reduction <add>, %46, %cst_20 [0] : vector<8x1xf32> to vector<1xf32>
    %48 = vector.shape_cast %47 : vector<1xf32> to vector<1x1xf32>
    %49 = vector.shape_cast %48 : vector<1x1xf32> to vector<1x1x1xf32>
    %c0_21 = arith.constant 0 : index
    %c0_22 = arith.constant 0 : index
    %c0_23 = arith.constant 0 : index
    %50 = vector.load %arg6[%c0_21, %c0_22, %c0_23] : memref<1x1x1xf32, #tpu.memory_space<vmem>>, vector<1x1x1xf32>
    tpu.vector_store %arg6[%c0_21, %c0_22, %c0_23], %49 {strides = array<i32>} : memref<1x1x1xf32, #tpu.memory_space<vmem>>, vector<1x1x1xf32>,
    return
  }
  func.func @transform_0(%arg0: i32) -> (i32, i32) {
    %c0_i32 = arith.constant 0 : i32
    %c0_i32_0 = arith.constant 0 : i32
    return %arg0, %c0_i32 : i32, i32
  }
  func.func @transform_1(%arg0: i32) -> (i32, i32) {
    %c0_i32 = arith.constant 0 : i32
    %c0_i32_0 = arith.constant 0 : i32
    return %arg0, %c0_i32 : i32, i32
  }
  func.func @transform_2(%arg0: i32) -> (i32, i32) {
    %c0_i32 = arith.constant 0 : i32
    %c0_i32_0 = arith.constant 0 : i32
    return %arg0, %c0_i32 : i32, i32
  }
  func.func @transform_3(%arg0: i32) -> (i32, i32) {
    %c0_i32 = arith.constant 0 : i32
    %c0_i32_0 = arith.constant 0 : i32
    return %arg0, %c0_i32 : i32, i32
  }
  func.func @transform_4(%arg0: i32) -> (i32, i32) {
    %c0_i32 = arith.constant 0 : i32
    %c0_i32_0 = arith.constant 0 : i32
    return %arg0, %c0_i32 : i32, i32
  }
  func.func @transform_5(%arg0: i32) -> (i32, i32, i32) {
    %c0_i32 = arith.constant 0 : i32
    %c0_i32_0 = arith.constant 0 : i32
    %c0_i32_1 = arith.constant 0 : i32
    return %arg0, %c0_i32, %c0_i32_0 : i32, i32, i32
  }
}

</mosaic_0001>

<bundles_post_ra>
// kernel: tpu_custom_call.1
= control target key start
LH: loop header
LB: loop body
LE: loop exit
PB: predicated region body
PF: predicated region fallthrough
CT: control target
= control target key end

     0   :  { %10 = vsyncpa [#allocation3], 0  ;;  %s283_s0 = inlined_call_operand.vmem [shape: f32[8,32], index: 0, kind: input, shape index: {}]   ;;  %s284_s1 = inlined_call_operand.hbm [shape: f32[8,32], index: 1, kind: input, shape index: {}]   ;;  %s285_s2 = inlined_call_operand.vmem [shape: f32[8,32], index: 2, kind: input, shape index: {}]   ;;  %s286_s3 = inlined_call_operand.hbm [shape: f32[8,32], index: 3, kind: input, shape index: {}]   ;;  %s287_s4 = inlined_call_operand.vmem [shape: f32[8,1], index: 4, kind: input, shape index: {}]   ;;  %s288_s5 = inlined_call_operand.hbm [shape: f32[1,1,1], index: 5, kind: output, shape index: {}]  }
   0x1   :  { %11 = vsyncpa [#allocation6], 0 }
   0x2   :  { %12 = vsyncpa [#allocation4], 0  ;;  %s199_s18 = smov [#allocation2]   ;;  %s200_s20 = smov [#allocation5]  }
   0x3   :  { %s21_s19 = sshll.u32 %s199_s18, 4  ;;  %s33_s21 = sshll.u32 %s200_s20, 4  ;;  %s22_s19 = int_to_ptr.vmem [resolvable:$true] %s21_s19  ;;  %s34_s21 = int_to_ptr.vmem [resolvable:$true] %s33_s21 }
   0x4   :  { %s127_s24 = scalar_lea.hbm %s284_s1, 128 }
   0x5   :  { %p128_p0 = scmp.ne.s32.totalorder %s284_s1, %s127_s24  ;;  %p131_p1 = scmp.lt.u32.totalorder %s127_s24, %s284_s1 }
   0x7   :  { %p133_p2 = pnand %p131_p1, %p128_p0 }
   0x9   :  { %136 = shalt.err (!%p133_p2)
}
   0xa   :  { %s137_s29 = scalar_lea.vmem %s22_s19, 128  ;;  %p142_p4 = scmp.lt.s32.totalorder %s22_s19, %s22_s19 }
   0xb   :  { %p138_p3 = scmp.ne.s32.totalorder %s22_s19, %s137_s29  ;;  %p143_p5 = scmp.lt.s32.totalorder %s137_s29, %s137_s29 }
   0xd   :  { %p144_p6 = por %p143_p5, %p142_p4 }
   0xf   :  { %p145_p7 = pnand %p144_p6, %p138_p3 }
  0x11   :  { %148 = shalt.err (!%p145_p7)
}
  0x12   :  { %24 = dma.hbm_to_vmem [thread:$0]  %s284_s1, 128, %s22_s19, [#allocation3]  }
  0x13   :  { %s149_s9 = scalar_lea.hbm %s286_s3, 128 }
  0x14   :  { %p150_p8 = scmp.ne.s32.totalorder %s286_s3, %s149_s9  ;;  %p153_p9 = scmp.lt.u32.totalorder %s149_s9, %s286_s3 }
  0x16   :  { %p155_p10 = pnand %p153_p9, %p150_p8 }
  0x18   :  { %158 = shalt.err (!%p155_p10)
}
  0x19   :  { %s159_s14 = scalar_lea.vmem %s34_s21, 128  ;;  %p164_p12 = scmp.lt.s32.totalorder %s34_s21, %s34_s21 }
  0x1a   :  { %p160_p11 = scmp.ne.s32.totalorder %s34_s21, %s159_s14  ;;  %p165_p13 = scmp.lt.s32.totalorder %s159_s14, %s159_s14 }
  0x1c   :  { %p166_p0 = por %p165_p13, %p164_p12 }
  0x1e   :  { %p167_p1 = pnand %p166_p0, %p160_p11 }
  0x20   :  { %170 = shalt.err (!%p167_p1)
}
  0x21   :  { %36 = dma.hbm_to_vmem [thread:$0]  %s286_s3, 128, %s34_s21, [#allocation6]  }
  0x22   :  { %193 = dma.done.wait [#allocation3], 128  }
  0x23   :  { %194 = vsyncadd [#allocation3], 4294967168 }
  0x24   :  { %195 = dma.done.wait [#allocation6], 128  }
  0x25   :  { %196 = vsyncadd [#allocation6], 4294967168  ;;  %vm55_vm0 = vcmask 261120   ;;  %v72_v0 = vld [vmem:[#allocation5] sm:$0xff]  ;;  %v52_v1 = vld [vmem:[%s285_s2] sm:$0xff]  ;;  %vm94_vm1 = vcmask 7168  }
  0x26   :  { %v73_v2 = vld [vmem:[%s283_s0] sm:$0xff]  ;;  %v74_v3 = vmul.f32 %v72_v0, %v72_v0  ;;  %v54_v4 = vmul.f32 %v52_v1, %v52_v1  ;;  %s201_s3 = smov [#allocation7]   ;;  %vm102_vm2 = vcmask 0  }
  0x27   :  { %v78_v5 = vmul.f32 %v73_v2, %v73_v2  ;;  %v53_v6 = vld [vmem:[#allocation2] sm:$0xff]  ;;  %v82_v12 = vmul.f32 %v73_v2, %v72_v0  ;;  %s110_s20 = sshll.u32 %s201_s3, 4  ;;  %s111_s20 = int_to_ptr.vmem [resolvable:$true] %s110_s20 }
  0x28   :  { %v59_v7 = vmul.f32 %v53_v6, %v53_v6  ;;  %v75_v8 = vsel %vm55_vm0, %v74_v3, 0.0  ;;  %v56_v9 = vsel %vm55_vm0, %v54_v4, 0.0  ;;  %v63_v13 = vmul.f32 %v53_v6, %v52_v1  ;;  %v51_v32 = vld [vmem:[%s287_s4] sm:$0xff]  ;;  %s171_s21 = scalar_lea.vmem %s111_s20, 16  ;;  %s175_s22 = scalar_lea.vmem %s111_s20, 32 }
  0x29   :  { %76 = vadd.xlane.f32.xlu1 %v75_v8  ;;  %57 = vadd.xlane.f32.xlu0 %v56_v9  ;;  %v79_v10 = vsel %vm55_vm0, %v78_v5, 0.0  ;;  %v83_v14 = vsel %vm55_vm0, %v82_v12, 0.0  ;;  %p172_p2 = scmp.ne.s32.totalorder %s111_s20, %s171_s21  ;;  %p176_p3 = scmp.lt.s32.totalorder %s111_s20, %s111_s20 }
  0x2a   :  { %v60_v11 = vsel %vm55_vm0, %v59_v7, 0.0  ;;  %v64_v15 = vsel %vm55_vm0, %v63_v13, 0.0  ;;  %p177_p4 = scmp.lt.s32.totalorder %s175_s22, %s171_s21 }
  0x2c   :  { %p178_p5 = por %p177_p4, %p176_p3 }
  0x2d   :  { %80 = vadd.xlane.f32.xlu1 %v79_v10  ;;  %61 = vadd.xlane.f32.xlu0 %v60_v11 }
  0x2e   :  { %p179_p6 = pnand %p178_p5, %p172_p2 }
  0x31   :  { %84 = vadd.xlane.f32.xlu1 %v83_v14  ;;  %65 = vadd.xlane.f32.xlu0 %v64_v15 }
  0xb6   :  { %v77_v16 = vpop.xlane.xlu1 %76  ;;  %v58_v17 = vpop.xlane.xlu0 %57 }
  0xb7   :  { %v86_v18 = vmax.f32 %v77_v16, 1e-24  ;;  %v67_v21 = vmax.f32 %v58_v17, 1e-24 }
  0xba   :  { %v81_v19 = vpop.xlane.xlu1 %80  ;;  %v62_v20 = vpop.xlane.xlu0 %61 }
  0xbb   :  { %v87_v22 = vmax.f32 %v81_v19, 1e-24  ;;  %v68_v23 = vmax.f32 %v62_v20, 1e-24 }
  0xbd   :  { %v88_v24 = vmul.f32 %v87_v22, %v86_v18  ;;  %v69_v25 = vmul.f32 %v68_v23, %v67_v21 }
  0xbe   :  { %v85_v26 = vpop.xlane.xlu1 %84  ;;  %v66_v27 = vpop.xlane.xlu0 %65 }
  0xbf   :  { %123 = vrsqrt.f32 %v88_v24 }
  0xc0   :  { %125 = vrsqrt.f32 %v69_v25 }
  0xc9   :  { %v124_v28 = vpop.eup %123 }
  0xca   :  { %v126_v29 = vpop.eup %125  ;;  %v90_v30 = vmul.f32 %v124_v28, %v85_v26 }
  0xcb   :  { %v71_v31 = vmul.f32 %v126_v29, %v66_v27 }
  0xcd   :  { %v91_v33 = vadd.f32 %v90_v30, %v71_v31 }
  0xcf   :  { %v92_v34 = vmul.f32 %v91_v33, %v51_v32 }
  0xd1   :  { %v95_v35 = vsel %vm94_vm1, %v92_v34, 0.0 }
  0xd2   :  { %v96_v36 = vrot.slane %v95_v35, 4 }
  0xd4   :  { %v97_v37 = vadd.f32 %v96_v36, %v95_v35 }
  0xd6   :  { %v98_v38 = vrot.slane %v97_v37, 2 }
  0xd8   :  { %v99_v39 = vadd.f32 %v98_v38, %v97_v37 }
  0xda   :  { %v100_v40 = vrot.slane %v99_v39, 1 }
  0xdc   :  { %v101_v41 = vadd.f32 %v100_v40, %v99_v39 }
  0xde   :  { %103 = vst.msk [vmem:[#allocation7] sm:$0x1] %vm102_vm2, %v101_v41 }
  0xdf   :  { %182 = shalt.err (!%p179_p6)
}
  0xe0   :  { %s183_s24 = scalar_lea.hbm %s288_s5, 16 }
  0xe1   :  { %p184_p7 = scmp.ne.s32.totalorder %s288_s5, %s183_s24  ;;  %p187_p8 = scmp.lt.u32.totalorder %s183_s24, %s288_s5 }
  0xe3   :  { %p189_p9 = pnand %p187_p8, %p184_p7 }
  0xe5   :  { %192 = shalt.err (!%p189_p9)
}
  0xe6   :  { %113 = dma.vmem_to_hbm [thread:$0]  %s111_s20, 16, %s288_s5, [#allocation4]  }
  0xe7   :  { %197 = dma.done.wait [#allocation4], 16  }
  0xe8   :  { %198 = vsyncadd [#allocation4], 4294967280 }
  0xe9   :  { %117 = vsyncpa [#allocation3], 1 }
  0xea   :  { %118 = vsyncpa [#allocation6], 1 }
  0xeb   :  { %119 = vsyncpa [#allocation4], 1 }

</bundles_post_ra>
